<compile_context>
chip_gen: v5e
topology: v5e:2x2
jax: 0.10.0
libtpu: 0.0.40
codegen_flags: <defaults>
</compile_context>

<pallas_src>
import functools

import jax
import jax.numpy as jnp
from jax.experimental import pallas as pl
from jax.experimental.pallas import tpu as pltpu


def _round_up(x, m):
    return (x + m - 1) // m * m


def _fc_decoder_kernel(z_ref, w1_ref, b1_ref, w2_ref, b2_ref, out_ref,
                       *, use_sigmoid):
    # First layer (recomputed per output tile; K=latent is tiny so this is a
    # handful of MXU cycles and avoids any scratch / pl.when serialization).
    z = z_ref[...].astype(jnp.bfloat16)
    w1 = w1_ref[...].astype(jnp.bfloat16)
    h1 = jnp.dot(z, w1, preferred_element_type=jnp.float32)      # MXU, f32 acc
    h1 = jnp.maximum(h1 + b1_ref[...], 0.0)                      # bias + ReLU (f32)

    # Second layer on the current output tile.
    w2 = w2_ref[...].astype(jnp.bfloat16)
    x = jnp.dot(h1.astype(jnp.bfloat16), w2,
                preferred_element_type=jnp.float32)              # MXU, f32 acc
    x = x + b2_ref[...]                                          # f32 bias add
    if use_sigmoid:
        # sigmoid(x) = 1 / (1 + exp(-x)); exp on EUP, approx reciprocal keeps
        # the divide on the EUP slot instead of the VALU.
        x = pl.reciprocal(1.0 + jnp.exp(-x), approx=True)
    out_ref[...] = x.astype(out_ref.dtype)


def fc_decoder(z, w1, b1, w2, b2, *, sigmoid=True, batch_tile=512,
               out_tile=None, out_dtype=None):
    """Pallas implementation of FCDecoder.forward.

    z  : (B, latent)
    w1 : (latent, hidden)      (nn.Linear weight, pre-transposed)
    b1 : (hidden,)
    w2 : (hidden, output_dim)  (pre-transposed)
    b2 : (output_dim,)
    returns (B, output_dim) in `out_dtype` (default float32).
    """
    B, L = z.shape
    H = w1.shape[1]
    O = w2.shape[1]
    assert w1.shape == (L, H) and b1.shape[-1] == H
    assert w2.shape == (H, O) and b2.shape[-1] == O

    out_dtype = jnp.dtype(out_dtype) if out_dtype is not None else jnp.dtype(jnp.float32)

    # ---- Batch tile: one full-dim block, or balanced multiples of 16. ----
    if B <= batch_tile:
        TB, nb = B, 1                      # full-dim block: legal for any B
    else:
        nb = pl.cdiv(B, batch_tile)
        TB = _round_up(pl.cdiv(B, nb), 16)
        nb = pl.cdiv(B, TB)

    # ---- Output tile: one lane-dense tile over all of O when it fits VMEM. ----
    if out_tile is None:
        fits = TB * max(O, 128) * (8 + 2 * out_dtype.itemsize) <= (12 << 20)
        out_tile = O if fits else 1024
    if O <= out_tile:
        TN, nt = O, 1                      # full-dim block, inner axis collapses
    else:
        TN = _round_up(min(out_tile, O), 128)
        nt = pl.cdiv(O, TN)

    # Biases as (1, dim) f32 rows (tiny; broadcast-added in f32 in the kernel).
    b1_2d = b1.reshape(1, H).astype(jnp.float32)
    b2_2d = b2.reshape(1, O).astype(jnp.float32)

    # ---- Accurate VMEM budget: 2 buffers per streamed operand + f32 temps. ----
    vmem_bytes = (2 * TB * L * z.dtype.itemsize        # z tiles
                  + 2 * L * H * w1.dtype.itemsize      # w1 (resident)
                  + 2 * H * 4                          # b1
                  + 2 * H * TN * w2.dtype.itemsize     # w2 tiles
                  + 2 * TN * 4                         # b2 tiles
                  + 2 * TB * TN * out_dtype.itemsize   # out tiles
                  + TB * (H + 2 * TN) * 4)             # h1 / x f32 temporaries
    vmem_limit = int(min(max(vmem_bytes + (4 << 20), 16 << 20), 48 << 20))

    kernel = functools.partial(_fc_decoder_kernel, use_sigmoid=sigmoid)

    return pl.pallas_call(
        kernel,
        out_shape=jax.ShapeDtypeStruct((B, O), out_dtype),
        grid_spec=pltpu.PrefetchScalarGridSpec(
            num_scalar_prefetch=0,
            grid=(nb, nt),
            in_specs=[
                pl.BlockSpec((TB, L), lambda i, j: (i, 0)),    # z : batch-streamed
                pl.BlockSpec((L, H), lambda i, j: (0, 0)),     # w1: VMEM-resident
                pl.BlockSpec((1, H), lambda i, j: (0, 0)),     # b1: VMEM-resident
                pl.BlockSpec((H, TN), lambda i, j: (0, j)),    # w2: output-tiled
                pl.BlockSpec((1, TN), lambda i, j: (0, j)),    # b2: output-tiled
            ],
            out_specs=pl.BlockSpec((TB, TN), lambda i, j: (i, j)),
        ),
        compiler_params=pltpu.CompilerParams(
            dimension_semantics=("parallel", "parallel"),
            vmem_limit_bytes=vmem_limit,
        ),
    )(z, w1, b1_2d, w2, b2_2d)


def init_params(key, latent_size, hidden_size, output_dim):
    """Deterministic init mimicking PyTorch nn.Linear default (uniform +-1/sqrt(fan_in))."""
    k1, k2, k3, k4 = jax.random.split(key, 4)
    bound1 = 1.0 / jnp.sqrt(latent_size)
    bound2 = 1.0 / jnp.sqrt(hidden_size)
    # Stored already transposed: (in_features, out_features).
    w1 = jax.random.uniform(k1, (latent_size, hidden_size), jnp.float32, -bound1, bound1)
    b1 = jax.random.uniform(k2, (hidden_size,), jnp.float32, -bound1, bound1)
    w2 = jax.random.uniform(k3, (hidden_size, output_dim), jnp.float32, -bound2, bound2)
    b2 = jax.random.uniform(k4, (output_dim,), jnp.float32, -bound2, bound2)
    return w1, b1, w2, b2


def fc_decoder_ref_f32(z, w1, b1, w2, b2, *, sigmoid=True):
    """Pure-f32 reference (matches the PyTorch module semantics)."""
    h1 = jnp.maximum(z @ w1 + b1, 0.0)
    x = h1 @ w2 + b2
    return jax.nn.sigmoid(x) if sigmoid else x


def fc_decoder_ref_bf16(z, w1, b1, w2, b2, *, sigmoid=True):
    """Reference matching the kernel's bf16-operand / f32-accumulate numerics."""
    zb, w1b, w2b = (a.astype(jnp.bfloat16) for a in (z, w1, w2))
    h1 = jnp.maximum(jnp.dot(zb, w1b, preferred_element_type=jnp.float32)
                     + b1.astype(jnp.float32), 0.0)
    x = jnp.dot(h1.astype(jnp.bfloat16), w2b,
                preferred_element_type=jnp.float32) + b2.astype(jnp.float32)
    return jax.nn.sigmoid(x) if sigmoid else x


if __name__ == "__main__":
    key = jax.random.PRNGKey(0)

    # ---- Config 1: small shapes consistent with the module. ----
    batch, latent, hidden, out_dim = 8, 16, 32, 64
    kz, kp = jax.random.split(key)
    z = jax.random.normal(kz, (batch, latent), dtype=jnp.float32)
    w1, b1, w2, b2 = init_params(kp, latent, hidden, out_dim)

    out = jax.block_until_ready(fc_decoder(z, w1, b1, w2, b2, sigmoid=True))
    assert out.shape == (batch, out_dim) and out.dtype == jnp.float32
    assert jnp.allclose(out, fc_decoder_ref_bf16(z, w1, b1, w2, b2, sigmoid=True),
                        atol=4e-3, rtol=0)
    assert jnp.allclose(out, fc_decoder_ref_f32(z, w1, b1, w2, b2, sigmoid=True),
                        atol=3e-2, rtol=0)

    # sigmoid=False branch.
    out_ns = jax.block_until_ready(fc_decoder(z, w1, b1, w2, b2, sigmoid=False))
    assert jnp.allclose(out_ns, fc_decoder_ref_bf16(z, w1, b1, w2, b2, sigmoid=False),
                        atol=4e-3, rtol=0)

    # ---- Config 2: non-aligned batch/output; default = single wide tile. ----
    batch2, latent2, hidden2, out2 = 300, 16, 32, 600
    kz2, kp2 = jax.random.split(jax.random.PRNGKey(1))
    z2 = jax.random.normal(kz2, (batch2, latent2), dtype=jnp.float32)
    w1b_, b1b_, w2b_, b2b_ = init_params(kp2, latent2, hidden2, out2)
    ref2_bf16 = fc_decoder_ref_bf16(z2, w1b_, b1b_, w2b_, b2b_, sigmoid=True)
    ref2_f32 = fc_decoder_ref_f32(z2, w1b_, b1b_, w2b_, b2b_, sigmoid=True)

    out2 = jax.block_until_ready(fc_decoder(z2, w1b_, b1b_, w2b_, b2b_, sigmoid=True))
    assert out2.shape == (batch2, out2.shape[1]) == (batch2, 600)
    assert jnp.allclose(out2, ref2_bf16, atol=4e-3, rtol=0)
    assert jnp.allclose(out2, ref2_f32, atol=3e-2, rtol=0)

    # Forced multi-tile path (batch and output both tiled, ragged tail blocks).
    out2_t = jax.block_until_ready(
        fc_decoder(z2, w1b_, b1b_, w2b_, b2b_, sigmoid=True,
                   batch_tile=128, out_tile=256))
    assert jnp.allclose(out2_t, ref2_bf16, atol=4e-3, rtol=0)

    # bf16 output path (v5e store-bandwidth saver).
    out2_bf16 = jax.block_until_ready(
        fc_decoder(z2, w1b_, b1b_, w2b_, b2b_, sigmoid=True, out_dtype=jnp.bfloat16))
    assert out2_bf16.dtype == jnp.bfloat16
    assert jnp.allclose(out2_bf16.astype(jnp.float32), ref2_bf16, atol=8e-3, rtol=0)

    print("KERNEL_OK")
</pallas_src>

<mosaic_0001>
module attributes {stable_mosaic.version = 11 : i64} {
  func.func @_fc_decoder_kernel(%arg0: i32, %arg1: i32, %arg2: memref<8x16xf32, #tpu.memory_space<vmem>>, %arg3: memref<16x32xf32, #tpu.memory_space<vmem>>, %arg4: memref<1x32xf32, #tpu.memory_space<vmem>>, %arg5: memref<32x64xf32, #tpu.memory_space<vmem>>, %arg6: memref<1x64xf32, #tpu.memory_space<vmem>>, %arg7: memref<8x64xf32, #tpu.memory_space<vmem>>) attributes {dimension_semantics = [#tpu.dimension_semantics<parallel>, #tpu.dimension_semantics<parallel>], iteration_bounds = array<i64: 1, 1>, scalar_prefetch = 0 : i64, scratch_operands = 0 : i64, tpu.core_type = #tpu.core_type<tc>, window_params = [{transform_indices = @transform_0, window_bounds = array<i64: 8, 16>}, {pipeline_mode = #tpu.pipeline_mode<synchronous>, transform_indices = @transform_1, window_bounds = array<i64: 16, 32>}, {pipeline_mode = #tpu.pipeline_mode<synchronous>, transform_indices = @transform_2, window_bounds = array<i64: 1, 32>}, {transform_indices = @transform_3, window_bounds = array<i64: 32, 64>}, {transform_indices = @transform_4, window_bounds = array<i64: 1, 64>}, {transform_indices = @transform_5, window_bounds = array<i64: 8, 64>}]} {
    %c0 = arith.constant 0 : index
    %c0_0 = arith.constant 0 : index
    %0 = vector.load %arg2[%c0, %c0_0] : memref<8x16xf32, #tpu.memory_space<vmem>>, vector<8x16xf32>
    %1 = arith.truncf %0 : vector<8x16xf32> to vector<8x16xbf16>
    %c0_1 = arith.constant 0 : index
    %c0_2 = arith.constant 0 : index
    %2 = vector.load %arg3[%c0_1, %c0_2] : memref<16x32xf32, #tpu.memory_space<vmem>>, vector<16x32xf32>
    %3 = arith.truncf %2 : vector<16x32xf32> to vector<16x32xbf16>
    %cst = arith.constant dense<0.000000e+00> : vector<8x32xf32>
    %4 = tpu.matmul %1, %3, %cst {dimension_numbers = #tpu.dot_dimension_numbers<[1], [0], [0], [1], [0, 0, 1, 1], [], []>} : vector<8x16xbf16>, vector<16x32xbf16>, vector<8x32xf32> -> vector<8x32xf32>
    %c0_3 = arith.constant 0 : index
    %c0_4 = arith.constant 0 : index
    %5 = vector.load %arg4[%c0_3, %c0_4] : memref<1x32xf32, #tpu.memory_space<vmem>>, vector<1x32xf32>
    %6 = vector.broadcast %5 : vector<1x32xf32> to vector<8x32xf32>
    %7 = arith.addf %4, %6 : vector<8x32xf32>
    %cst_5 = arith.constant 0.000000e+00 : f32
    %8 = vector.broadcast %cst_5 : f32 to vector<8x32xf32>
    %9 = arith.maximumf %7, %8 : vector<8x32xf32>
    %c0_6 = arith.constant 0 : index
    %c0_7 = arith.constant 0 : index
    %10 = vector.load %arg5[%c0_6, %c0_7] : memref<32x64xf32, #tpu.memory_space<vmem>>, vector<32x64xf32>
    %11 = arith.truncf %10 : vector<32x64xf32> to vector<32x64xbf16>
    %12 = arith.truncf %9 : vector<8x32xf32> to vector<8x32xbf16>
    %cst_8 = arith.constant dense<0.000000e+00> : vector<8x64xf32>
    %13 = tpu.matmul %12, %11, %cst_8 {dimension_numbers = #tpu.dot_dimension_numbers<[1], [0], [0], [1], [0, 0, 1, 1], [], []>} : vector<8x32xbf16>, vector<32x64xbf16>, vector<8x64xf32> -> vector<8x64xf32>
    %c0_9 = arith.constant 0 : index
    %c0_10 = arith.constant 0 : index
    %14 = vector.load %arg6[%c0_9, %c0_10] : memref<1x64xf32, #tpu.memory_space<vmem>>, vector<1x64xf32>
    %15 = vector.broadcast %14 : vector<1x64xf32> to vector<8x64xf32>
    %16 = arith.addf %13, %15 : vector<8x64xf32>
    %cst_11 = arith.constant 0.000000e+00 : f32
    %17 = vector.broadcast %cst_11 : f32 to vector<8x64xf32>
    %18 = arith.subf %17, %16 : vector<8x64xf32>
    %19 = math.exp %18 : vector<8x64xf32>
    %cst_12 = arith.constant 1.000000e+00 : f32
    %20 = vector.broadcast %cst_12 : f32 to vector<8x64xf32>
    %21 = arith.addf %20, %19 : vector<8x64xf32>
    %22 = tpu.reciprocal %21 {approx = true} : vector<8x64xf32> -> vector<8x64xf32>
    %c0_13 = arith.constant 0 : index
    %c0_14 = arith.constant 0 : index
    %23 = vector.load %arg7[%c0_13, %c0_14] : memref<8x64xf32, #tpu.memory_space<vmem>>, vector<8x64xf32>
    tpu.vector_store %arg7[%c0_13, %c0_14], %22 {strides = array<i32>} : memref<8x64xf32, #tpu.memory_space<vmem>>, vector<8x64xf32>,
    return
  }
  func.func @transform_0(%arg0: i32, %arg1: i32) -> (i32, i32) {
    %c0_i32 = arith.constant 0 : i32
    %c0_i32_0 = arith.constant 0 : i32
    return %arg0, %c0_i32 : i32, i32
  }
  func.func @transform_1(%arg0: i32, %arg1: i32) -> (i32, i32) {
    %c0_i32 = arith.constant 0 : i32
    %c0_i32_0 = arith.constant 0 : i32
    %c0_i32_1 = arith.constant 0 : i32
    return %c0_i32, %c0_i32_0 : i32, i32
  }
  func.func @transform_2(%arg0: i32, %arg1: i32) -> (i32, i32) {
    %c0_i32 = arith.constant 0 : i32
    %c0_i32_0 = arith.constant 0 : i32
    %c0_i32_1 = arith.constant 0 : i32
    return %c0_i32, %c0_i32_0 : i32, i32
  }
  func.func @transform_3(%arg0: i32, %arg1: i32) -> (i32, i32) {
    %c0_i32 = arith.constant 0 : i32
    %c0_i32_0 = arith.constant 0 : i32
    return %c0_i32, %arg1 : i32, i32
  }
  func.func @transform_4(%arg0: i32, %arg1: i32) -> (i32, i32) {
    %c0_i32 = arith.constant 0 : i32
    %c0_i32_0 = arith.constant 0 : i32
    return %c0_i32, %arg1 : i32, i32
  }
  func.func @transform_5(%arg0: i32, %arg1: i32) -> (i32, i32) {
    %c0_i32 = arith.constant 0 : i32
    return %arg0, %arg1 : i32, i32
  }
}

</mosaic_0001>

<bundles_post_ra>
// kernel: tpu_custom_call.1
= control target key start
LH: loop header
LB: loop body
LE: loop exit
PB: predicated region body
PF: predicated region fallthrough
CT: control target
= control target key end

     0   :  { %10 = vsyncpa [#allocation3], 0  ;;  %s317_s0 = inlined_call_operand.hbm [shape: f32[8,16], index: 0, kind: input, shape index: {}]   ;;  %s318_s1 = inlined_call_operand.hbm [shape: f32[16,32], index: 1, kind: input, shape index: {}]   ;;  %s319_s2 = inlined_call_operand.vmem [shape: f32[1,32], index: 2, kind: input, shape index: {}]   ;;  %s320_s3 = inlined_call_operand.hbm [shape: f32[32,64], index: 3, kind: input, shape index: {}]   ;;  %s321_s4 = inlined_call_operand.vmem [shape: f32[1,64], index: 4, kind: input, shape index: {}]   ;;  %s322_s5 = inlined_call_operand.hbm [shape: f32[8,64], index: 5, kind: output, shape index: {}]  }
   0x1   :  { %11 = vsyncpa [#allocation6], 0  ;;  %s28_s20 = sshll.u32 %s318_s1, 4  ;;  %s29_s20 = int_to_ptr.hbm [resolvable:$true] %s28_s20 }
   0x2   :  { %12 = vsyncpa [#allocation4], 0  ;;  %s263_s21 = smov [#allocation5]   ;;  %s18_s25 = sshll.u32 %s317_s0, 4  ;;  %s19_s25 = int_to_ptr.hbm [resolvable:$true] %s18_s25 }
   0x3   :  { %s30_s22 = sshll.u32 %s263_s21, 4  ;;  %s264_s26 = smov 128   ;;  %s31_s22 = int_to_ptr.vmem [resolvable:$true] %s30_s22 }
   0x4   :  { %s265_s27 = smov 8   ;;  %s266_s28 = smov [#allocation2]  }
   0x5   :  { %36 = dma.hbm_to_vmem [thread:$0]  %s29_s20, 256, %s31_s22, [#allocation6], %s264_s26, %s264_s26, %s265_s27  }
   0x6   :  { %s20_s29 = sshll.u32 %s266_s28, 4  ;;  %s43_s7 = sshll.u32 %s320_s3, 4  ;;  %s21_s29 = int_to_ptr.vmem [resolvable:$true] %s20_s29  ;;  %s44_s7 = int_to_ptr.hbm [resolvable:$true] %s43_s7 }
   0x7   :  { %23 = dma.hbm_to_vmem [thread:$0]  %s19_s25, 128, %s21_s29, [#allocation3]  }
   0x8   :  { %s267_s1 = smov [#allocation7]  }
   0x9   :  { %s45_s8 = sshll.u32 %s267_s1, 4  ;;  %s46_s8 = int_to_ptr.vmem [resolvable:$true] %s45_s8 }
   0xa   :  { %51 = dma.hbm_to_vmem [thread:$0]  %s44_s7, 512, %s46_s8, [#allocation6], %s264_s26, %s264_s26, %s265_s27  }
   0xb   :  { %257 = dma.done.wait [#allocation3], 128  }
   0xc   :  { %258 = vsyncadd [#allocation3], 4294967168 }
   0xd   :  { %259 = dma.done.wait [#allocation6], 768  }
   0xe   :  { %260 = vsyncadd [#allocation6], 4294966528  ;;  %v69_v0 = vld [vmem:[#allocation5] sm:$0xff]  ;;  %v70_v1 = vld [vmem:[#allocation5 + $0x8] sm:$0xff]  ;;  %vm76_vm0 = vcmask 130048   ;;  %vm105_vm1 = vcmask 261120  }
   0xf   :  { %v67_v2 = vld [vmem:[#allocation2] sm:$0xff]  ;;  %v71_v3 = vpack.c.bf16 %v70_v1, %v69_v0  ;;  %v96_v5 = vld [vmem:[#allocation7 + $0x10] sm:$0xff]  ;;  %v97_v6 = vld [vmem:[#allocation7 + $0x18] sm:$0xff]  ;;  %s136_s14 = sshll.u32 %s322_s5, 4  ;;  %vm127_vm2 = vcmask 523264   ;;  %s137_s14 = int_to_ptr.hbm [resolvable:$true] %s136_s14 }
  0x10   :  { %v68_v4 = vpack.c.bf16 %v67_v2, %v67_v2  ;;  %v99_v7 = vpack.c.bf16 %v97_v6, %v96_v5  ;;  %v94_v8 = vld [vmem:[#allocation7] sm:$0xff]  ;;  %v95_v9 = vld [vmem:[#allocation7 + $0x8] sm:$0xff] }
  0x11   :  { %87 = vmatpush.bf16.msra.mxu0 %v71_v3  ;;  %v98_v10 = vpack.c.bf16 %v95_v9, %v94_v8  ;;  %v155_v11 = vld [vmem:[%s319_s2] ss:$0 sm:$0xff]  ;;  %s268_s2 = smov [#allocation8]  }
  0x12   :  { %115 = vmatpush.bf16.msra.mxu1 %v99_v7  ;;  %v156_v17 = vld [vmem:[%s321_s4] ss:$0 sm:$0xff]  ;;  %s134_s11 = sshll.u32 %s268_s2, 4  ;;  %s135_s11 = int_to_ptr.vmem [resolvable:$true] %s134_s11 }
  0x14   :  { %147 = vmatmul.msk.bf16.vlgmr.msra.gmra.mxu0 %vm76_vm0, %v68_v4 }
  0x16   :  { %116 = vmatpush.bf16.msra.mxu1 %v98_v10 }
  0x91   :  { %v89_v12 = vpop.f32.mrf.mxu0 }
  0x92   :  { %v90_v13 = vadd.f32 %v155_v11, %v89_v12 }
  0x94   :  { %v93_v14 = vmax.f32 %v90_v13, 0.0 }
  0x96   :  { %v100_v15 = vpack.c.bf16 %v93_v14, %v93_v14 }
  0x98   :  { %148 = vmatmul.msk.bf16.vlgmr.msra.gmra.mxu1 %vm105_vm1, %v100_v15 }
  0x99   :  { %v91_v16 = vpop.f32.mrf.mxu0 }
 0x115   :  { %v118_v18 = vpop.f32.mrf.mxu1 }
 0x116   :  { %v119_v19 = vadd.f32 %v156_v17, %v118_v18 }
 0x118   :  { %v122_v20 = vsub.f32 0.0, %v119_v19 }
 0x11a   :  { %v123_v21 = vmul.f32 1.442695, %v122_v20 }
 0x11c   :  { %157 = vpow2.f32 %v123_v21 }
 0x11d   :  { %v120_v22 = vpop.f32.mrf.mxu1 }
 0x122   :  { %v158_v23 = vpop.eup %157 }
 0x123   :  { %v125_v24 = vadd.f32 1.0, %v158_v23 }
 0x125   :  { %159 = vrcp.f32 %v125_v24 }
 0x12b   :  { %v160_v25 = vpop.eup %159 }
 0x12c   :  { %128 = vst.msk [vmem:[#allocation8] sm:$0xff] %vm127_vm2, %v160_v25 }
 0x12d   :  { %139 = dma.vmem_to_hbm [thread:$0]  %s135_s11, 128, %s137_s14, [#allocation4]  }
 0x12e   :  { %261 = dma.done.wait [#allocation4], 128  }
 0x12f   :  { %262 = vsyncadd [#allocation4], 4294967168 }
 0x130   :  { %144 = vsyncpa [#allocation3], 1 }
 0x131   :  { %145 = vsyncpa [#allocation6], 1 }
 0x132   :  { %146 = vsyncpa [#allocation4], 1 }

</bundles_post_ra>
